<compile_context>
chip_gen: v6e
topology: v6e:2x2x1
jax: 0.10.0
libtpu: 0.0.40
codegen_flags: <defaults>
</compile_context>

<pallas_src>
import math

import jax
import jax.numpy as jnp
from jax.experimental import pallas as pl
from jax.experimental.pallas import tpu as pltpu

_LANES = 128
_TARGET_BLOCK_BYTES = 4 * 1024 * 1024   # 4 MiB per buffer; x2 (in+out) x2 (double-buffer) ~= 16 MiB
_VMEM_LIMIT_BYTES = 40 * 1024 * 1024    # > v5e's 16 MiB scoped default, < v7x's 64 MiB physical


def _scale_kernel(fc_ref, x_ref, o_ref):
    # fc_ref is a single scalar in SMEM; the broadcast against the tile is free
    # on the VPU.
    o_ref[...] = (x_ref[...] * fc_ref[0]).astype(o_ref.dtype)


def sample_fc_forward(x, fc):
    """Pallas equivalent of `x @ fc` with fc of shape (1,): x[..., 0] * fc[0]."""
    assert fc.shape == (1,)
    assert x.shape[-1] == 1, "SampleFC contracts a size-1 last dim"
    out_shape = x.shape[:-1]
    out_dtype = jnp.result_type(x.dtype, fc.dtype)

    m = math.prod(out_shape) if out_shape else 1
    if m == 0:
        # Empty input: nothing to launch.
        return jnp.zeros(out_shape, out_dtype)

    flat = x.reshape(m)

    # Lane-dense view: (rows, 128). Pad only the sub-128 remainder (rare); the
    # ragged final row-block is handled by Pallas masking, never by padding.
    rows = pl.cdiv(m, _LANES)
    needs_pad = rows * _LANES != m
    if needs_pad:
        flat = jnp.pad(flat, (0, rows * _LANES - m))
    x2d = flat.reshape(rows, _LANES)

    # dtype-aware block sizing: constant bytes per DMA step regardless of dtype
    # (8192 rows @ f32, 16384 rows @ bf16 == 4 MiB). If the whole array is
    # smaller than one block, use the full extent (always a legal block shape).
    in_itemsize = jnp.dtype(x.dtype).itemsize
    target_rows = max(8, _TARGET_BLOCK_BYTES // (_LANES * in_itemsize))
    block_rows = min(rows, target_rows)

    grid = (pl.cdiv(rows, block_rows),)

    out_itemsize = jnp.dtype(out_dtype).itemsize
    cost = pl.CostEstimate(
        flops=m,
        transcendentals=0,
        bytes_accessed=m * (in_itemsize + out_itemsize)
        + fc.size * jnp.dtype(fc.dtype).itemsize,
    )

    out2d = pl.pallas_call(
        _scale_kernel,
        out_shape=jax.ShapeDtypeStruct((rows, _LANES), out_dtype),
        grid_spec=pltpu.PrefetchScalarGridSpec(
            num_scalar_prefetch=0,
            grid=grid,
            in_specs=[
                # fc: a single scalar, kept in SMEM (no VMEM DMA per step).
                pl.BlockSpec(memory_space=pltpu.MemorySpace.SMEM),
                # x: lane-dense (block_rows, 128) tiles.
                pl.BlockSpec((block_rows, _LANES), lambda i: (i, 0)),
            ],
            out_specs=pl.BlockSpec((block_rows, _LANES), lambda i: (i, 0)),
        ),
        compiler_params=pltpu.CompilerParams(
            # "parallel" lets v7x megacore shard the row axis across its two
            # TensorCores; neutral on single-TC v5e/v6e.
            dimension_semantics=("parallel",),
            vmem_limit_bytes=_VMEM_LIMIT_BYTES,
        ),
        cost_estimate=cost,
    )(fc, x2d)

    flat_out = out2d.reshape(rows * _LANES)
    if needs_pad:
        flat_out = flat_out[:m]
    return flat_out.reshape(out_shape)


if __name__ == "__main__":
    key = jax.random.PRNGKey(0)
    # Shapes consistent with the module: last dim must be 1 (fc has length 1).
    x = jax.random.normal(key, (2, 4, 16, 1), dtype=jnp.float32)
    fc = jnp.array([4.0], dtype=jnp.float32)

    out = sample_fc_forward(x, fc)
    out = jax.block_until_ready(out)

    ref = x[..., 0] * fc[0]
    assert out.shape == ref.shape, (out.shape, ref.shape)
    assert jnp.allclose(out, ref, atol=1e-6, rtol=1e-6), "mismatch vs reference"

    print("KERNEL_OK")
</pallas_src>

<mosaic_0001>
module attributes {stable_mosaic.version = 11 : i64} {
  func.func @_scale_kernel(%arg0: i32, %arg1: memref<1xf32, #tpu.memory_space<smem>>, %arg2: memref<1x128xf32, #tpu.memory_space<vmem>>, %arg3: memref<1x128xf32, #tpu.memory_space<vmem>>) attributes {dimension_semantics = [#tpu.dimension_semantics<parallel>], iteration_bounds = array<i64: 1>, scalar_prefetch = 0 : i64, scratch_operands = 0 : i64, tpu.core_type = #tpu.core_type<tc>, window_params = [{transform_indices = @transform_0, window_bounds = array<i64: 1>}, {transform_indices = @transform_1, window_bounds = array<i64: 1, 128>}, {transform_indices = @transform_2, window_bounds = array<i64: 1, 128>}]} {
    %c0 = arith.constant 0 : index
    %c0_0 = arith.constant 0 : index
    %0 = vector.load %arg2[%c0, %c0_0] : memref<1x128xf32, #tpu.memory_space<vmem>>, vector<1x128xf32>
    %c0_1 = arith.constant 0 : index
    %1 = memref.load %arg1[%c0_1] : memref<1xf32, #tpu.memory_space<smem>>
    %2 = vector.broadcast %1 : f32 to vector<1x128xf32>
    %3 = arith.mulf %0, %2 : vector<1x128xf32>
    %c0_2 = arith.constant 0 : index
    %c0_3 = arith.constant 0 : index
    %4 = vector.load %arg3[%c0_2, %c0_3] : memref<1x128xf32, #tpu.memory_space<vmem>>, vector<1x128xf32>
    tpu.vector_store %arg3[%c0_2, %c0_3], %3 {strides = array<i32>} : memref<1x128xf32, #tpu.memory_space<vmem>>, vector<1x128xf32>,
    return
  }
  func.func @transform_0(%arg0: i32) -> i32 {
    %c0_i32 = arith.constant 0 : i32
    %c0_i32_0 = arith.constant 0 : i32
    return %c0_i32 : i32
  }
  func.func @transform_1(%arg0: i32) -> (i32, i32) {
    %c0_i32 = arith.constant 0 : i32
    %c0_i32_0 = arith.constant 0 : i32
    return %arg0, %c0_i32 : i32, i32
  }
  func.func @transform_2(%arg0: i32) -> (i32, i32) {
    %c0_i32 = arith.constant 0 : i32
    %c0_i32_0 = arith.constant 0 : i32
    return %arg0, %c0_i32 : i32, i32
  }
}

</mosaic_0001>

<bundles_post_ra>
// kernel: tpu_custom_call.1
= control target key start
LH: loop header
LB: loop body
LE: loop exit
PB: predicated region body
PF: predicated region fallthrough
CT: control target
= control target key end

     0   :  { %s80_s0 = inlined_call_operand.<no memory space> [shape: f32[1], index: 0, kind: input, shape index: {}]   ;;  %s81_s1 = inlined_call_operand.vmem [shape: f32[1,128], index: 1, kind: input, shape index: {}]   ;;  %s82_s2 = inlined_call_operand.hbm [shape: f32[1,128], index: 2, kind: output, shape index: {}]  }
   0x1   :  { %v13_v0 = vld [vmem:[%s81_s1] sm:$0x1]  ;;  %v15_v1 = vstv %s80_s0 }
   0x2   :  { %8 = vsyncpa [#allocation4], 0  ;;  %v16_v2 = vmul.f32 %v15_v1, %v13_v0  ;;  %s55_s13 = smov [#allocation3]  }
   0x3   :  { %s24_s14 = sshll.u32 %s55_s13, 4  ;;  %s25_s14 = int_to_ptr.vmem [resolvable:$true] %s24_s14 }
   0x4   :  { %17 = vst [vmem:[#allocation3] sm:$0x1] %v16_v2  ;;  %s33_s15 = scalar_lea.vmem %s25_s14, 16  ;;  %s37_s16 = scalar_lea.vmem %s25_s14, 32 }
   0x5   :  { %p34_p0 = scmp.ne.s32.totalorder %s25_s14, %s33_s15  ;;  %p38_p1 = scmp.lt.s32.totalorder %s25_s14, %s25_s14 }
   0x6   :  { %p39_p2 = scmp.lt.s32.totalorder %s37_s16, %s33_s15 }
   0x8   :  { %p40_p3 = por %p39_p2, %p38_p1 }
   0xa   :  { %p41_p4 = pnand %p40_p3, %p34_p0 }
   0xc   :  { %44 = shalt.err (!%p41_p4)
}
   0xd   :  { %27 = dma.vmem_to_hbm [thread:$0]  %s25_s14, 16, %s82_s2, [#allocation4]  }
   0xe   :  { %53 = dma.done.wait [#allocation4], 16  }
   0xf   :  { %54 = vsyncadd [#allocation4], 4294967280 }
  0x10   :  { %31 = vsyncpa [#allocation4], 1 }

</bundles_post_ra>
